<compile_context>
chip_gen: v7x
topology: tpu7x:2x2x1
jax: 0.10.0
libtpu: 0.0.40
codegen_flags: <defaults>
</compile_context>

<pallas_src>
import jax
import jax.numpy as jnp
from jax import lax
from jax.experimental import pallas as pl
from jax.experimental.pallas import tpu as pltpu


def decoder_attn_kernel(emb_ref, h0_ref, enct_ref, enc_ref,
                        wih_ref, whh_ref, b_ref,
                        wor_ref, woc_ref, bout_ref,
                        dec_ref, hid_ref, attn_ref,
                        rnn_scr):
    T, H = emb_ref.shape[1], emb_ref.shape[2]
    cd = emb_ref.dtype                       # MXU operand dtype (f32 or bf16)
    approx = cd == jnp.bfloat16              # approx EUP reciprocal only on the bf16 path

    # Input projection for all T steps in one matmul (bias = b_ih + b_hh folded in).
    emb = emb_ref[0]                                                   # (T, H) contiguous tile
    x_proj = jnp.dot(emb, wih_ref[...],
                     preferred_element_type=jnp.float32) + b_ref[...]  # (T, H) f32

    # tanh recurrence; only h is live across steps, each h_t streamed to VMEM scratch.
    # TODO(synk): hold W_hh in MXU weight registers across the T steps
    #             (pltpu.matmul_push_rhs / matmul_acc_lhs / matmul_pop).
    whh = whh_ref[...]                                                 # (H, H)
    h = h0_ref[0]                                                      # (1, H) f32
    for t in range(T):                       # T is small & static; scratch bounds live ranges
        h = jnp.tanh(x_proj[t:t + 1, :]
                     + jnp.dot(h.astype(cd), whh, preferred_element_type=jnp.float32))
        rnn_scr[pl.ds(t, 1), :] = h
    hid_ref[0] = h                                                     # final hidden (1, H)

    # Attention (all 2-D): scores = rnn @ enc^T (pre-transposed), softmax, ctx = attn @ enc.
    rnn = rnn_scr[...].astype(cd)                                      # (T, H)
    scores = jnp.dot(rnn, enct_ref[0], preferred_element_type=jnp.float32)   # (T, S)
    m = jnp.max(scores, axis=-1, keepdims=True)
    e = jnp.exp(scores - m)
    denom = jnp.sum(e, axis=-1, keepdims=True)
    attn = e * pl.reciprocal(denom, approx=approx)                     # EUP, off the VALU
    context = jnp.dot(attn.astype(cd), enc_ref[0],
                      preferred_element_type=jnp.float32)              # (T, H)

    # Output projection: two accumulating dots over the stacked weight halves (no concat).
    out = (jnp.dot(rnn, wor_ref[...], preferred_element_type=jnp.float32)
           + jnp.dot(context.astype(cd), woc_ref[...], preferred_element_type=jnp.float32)
           + bout_ref[...])                                            # (T, Vp) lane-dense

    dec_ref[0] = out
    attn_ref[0] = attn


def decoder_with_attention(dec_inputs, hidden, enc_output, params, *,
                           mxu_dtype=jnp.float32):
    """dec_inputs (B,T) int32; hidden (1,B,H); enc_output (B,S,H)."""
    emb_w, wih, whh, b_ih, b_hh, out_w, out_b = params
    B, T = dec_inputs.shape
    S = enc_output.shape[1]
    H = emb_w.shape[1]
    V = out_w.shape[0]
    Vp = ((V + 127) // 128) * 128            # lane-dense dec_out store + MXU-aligned N
    cd = jnp.dtype(mxu_dtype)

    # ---- glue (plain JAX: gather + one-off weight re-layout) ----
    # TODO(synk): at large T*H fuse the embedding gather in-kernel via scalar prefetch
    #             (PrefetchScalarGridSpec + pl.Element row gather) to drop the (B,T,H)
    #             HBM round-trip.
    embedded = jnp.take(emb_w, dec_inputs, axis=0).astype(cd)          # (B, T, H)
    h0 = hidden[0][:, None, :].astype(jnp.float32)                     # (B, 1, H)
    enc = enc_output.astype(cd)                                        # (B, S, H)
    enc_t = jnp.swapaxes(enc_output, 1, 2).astype(cd)                  # (B, H, S) pre-transposed
    wih_t = wih.T.astype(cd)                                           # (H, H)
    whh_t = whh.T.astype(cd)                                           # (H, H)
    b2 = (b_ih + b_hh).reshape(1, H).astype(jnp.float32)               # (1, H)
    wout_t = out_w.T                                                   # (2H, V)
    pad = ((0, 0), (0, Vp - V))
    wor = jnp.pad(wout_t[:H], pad).astype(cd)                          # (H, Vp)  rnn half
    woc = jnp.pad(wout_t[H:], pad).astype(cd)                          # (H, Vp)  ctx half
    bout = jnp.pad(out_b, (0, Vp - V)).reshape(1, Vp).astype(jnp.float32)

    out_shapes = (
        jax.ShapeDtypeStruct((B, T, Vp), jnp.float32),
        jax.ShapeDtypeStruct((B, 1, H), jnp.float32),
        jax.ShapeDtypeStruct((B, T, S), jnp.float32),
    )

    grid = (B,)   # one batch element per step; "parallel" shards across the 2 TCs on v7x
    # TODO(synk): at a real vocab add a second parallel grid axis tiling Vp (weight halves
    #             blocked (H, TN), dec_out blocked (1, T, TN)) to bound VMEM and feed both TCs.

    dec_p, hid, attn = pl.pallas_call(
        decoder_attn_kernel,
        out_shape=out_shapes,
        grid_spec=pltpu.PrefetchScalarGridSpec(
            num_scalar_prefetch=0,
            grid=grid,
            in_specs=[
                pl.BlockSpec((1, T, H), lambda b: (b, 0, 0)),   # embedded (time rows)
                pl.BlockSpec((1, 1, H), lambda b: (b, 0, 0)),   # h0
                pl.BlockSpec((1, H, S), lambda b: (b, 0, 0)),   # enc^T  (scores matmul)
                pl.BlockSpec((1, S, H), lambda b: (b, 0, 0)),   # enc    (context matmul)
                pl.BlockSpec((H, H),    lambda b: (0, 0)),      # W_ih^T
                pl.BlockSpec((H, H),    lambda b: (0, 0)),      # W_hh^T
                pl.BlockSpec((1, H),    lambda b: (0, 0)),      # b_ih + b_hh
                pl.BlockSpec((H, Vp),   lambda b: (0, 0)),      # W_out^T rnn half
                pl.BlockSpec((H, Vp),   lambda b: (0, 0)),      # W_out^T ctx half
                pl.BlockSpec((1, Vp),   lambda b: (0, 0)),      # b_out
            ],
            out_specs=[
                pl.BlockSpec((1, T, Vp), lambda b: (b, 0, 0)),  # dec_output (padded V)
                pl.BlockSpec((1, 1, H),  lambda b: (b, 0, 0)),  # final hidden
                pl.BlockSpec((1, T, S),  lambda b: (b, 0, 0)),  # attention weights
            ],
            scratch_shapes=[pltpu.VMEM((T, H), jnp.float32)],   # streamed rnn outputs
        ),
        compiler_params=pltpu.CompilerParams(
            dimension_semantics=("parallel",),
            vmem_limit_bytes=32 * 1024 * 1024,
        ),
    )(embedded, h0, enc_t, enc, wih_t, whh_t, b2, wor, woc, bout)

    dec_out = dec_p[:, :, :V]                 # drop vocab padding
    hidden_out = jnp.swapaxes(hid, 0, 1)      # (B,1,H) -> (1,B,H)
    return dec_out, hidden_out, attn


def reference(dec_inputs, hidden, enc_output, params):
    """Pure-JAX reference mirroring the PyTorch forward semantics."""
    emb_w, wih, whh, b_ih, b_hh, out_w, out_b = params
    embedded = jnp.take(emb_w, dec_inputs, axis=0)       # (B, T, H)
    h = hidden[0]                                        # (B, H)

    def step(h_prev, x_t):
        h_new = jnp.tanh(x_t @ wih.T + b_ih + h_prev @ whh.T + b_hh)
        return h_new, h_new

    xs = jnp.transpose(embedded, (1, 0, 2))              # (T, B, H)
    h_last, ys = lax.scan(step, h, xs)
    rnn_out = jnp.transpose(ys, (1, 0, 2))               # (B, T, H)

    scores = jnp.einsum('bth,bsh->bts', rnn_out, enc_output)
    attn = jax.nn.softmax(scores, axis=-1)
    context = jnp.einsum('bts,bsh->bth', attn, enc_output)
    cat = jnp.concatenate([rnn_out, context], axis=-1)
    dec_out = cat @ out_w.T + out_b
    return dec_out, h_last[None], attn


if __name__ == "__main__":
    B, T, S, H, V = 2, 8, 8, 32, 64   # batch, dec seq, enc seq, hidden, vocab

    key = jax.random.PRNGKey(0)
    ks = jax.random.split(key, 10)

    # Deterministic "parameters" (nn.Embedding, nn.RNN, nn.Linear shapes).
    emb_w = 0.1 * jax.random.normal(ks[0], (V, H), jnp.float32)          # embedding.weight
    wih   = 0.1 * jax.random.normal(ks[1], (H, H), jnp.float32)          # rnn.weight_ih_l0
    whh   = 0.1 * jax.random.normal(ks[2], (H, H), jnp.float32)          # rnn.weight_hh_l0
    b_ih  = 0.1 * jax.random.normal(ks[3], (H,), jnp.float32)            # rnn.bias_ih_l0
    b_hh  = 0.1 * jax.random.normal(ks[4], (H,), jnp.float32)            # rnn.bias_hh_l0
    out_w = 0.1 * jax.random.normal(ks[5], (V, 2 * H), jnp.float32)      # out.weight
    out_b = 0.1 * jax.random.normal(ks[6], (V,), jnp.float32)            # out.bias
    params = (emb_w, wih, whh, b_ih, b_hh, out_w, out_b)

    # Inputs.
    dec_inputs = jax.random.randint(ks[7], (B, T), 0, V, dtype=jnp.int32)
    hidden     = 0.1 * jax.random.normal(ks[8], (1, B, H), jnp.float32)
    enc_output = 0.5 * jax.random.normal(ks[9], (B, S, H), jnp.float32)

    ref_dec, ref_hid, ref_attn = reference(dec_inputs, hidden, enc_output, params)

    # f32 MXU path: tight check against the pure-JAX reference.
    dec_out, hid_out, attn = decoder_with_attention(
        dec_inputs, hidden, enc_output, params, mxu_dtype=jnp.float32)
    jax.block_until_ready((dec_out, hid_out, attn))
    assert jnp.allclose(dec_out, ref_dec, atol=1e-4, rtol=1e-4)
    assert jnp.allclose(hid_out, ref_hid, atol=1e-4, rtol=1e-4)
    assert jnp.allclose(attn, ref_attn, atol=1e-4, rtol=1e-4)

    # bf16 MXU-operand / f32-accumulate path (v6e/v7x MXU rate): looser tolerance.
    dec_bf, hid_bf, attn_bf = decoder_with_attention(
        dec_inputs, hidden, enc_output, params, mxu_dtype=jnp.bfloat16)
    jax.block_until_ready((dec_bf, hid_bf, attn_bf))
    assert jnp.allclose(dec_bf, ref_dec, atol=3e-2, rtol=3e-2)
    assert jnp.allclose(hid_bf, ref_hid, atol=3e-2, rtol=3e-2)
    assert jnp.allclose(attn_bf, ref_attn, atol=3e-2, rtol=3e-2)

    print("KERNEL_OK")
</pallas_src>

<mosaic_0001>
module attributes {stable_mosaic.version = 11 : i64} {
  func.func @decoder_attn_kernel(%arg0: i32, %arg1: memref<1x8x32xf32, #tpu.memory_space<vmem>>, %arg2: memref<1x1x32xf32, #tpu.memory_space<vmem>>, %arg3: memref<1x32x8xf32, #tpu.memory_space<vmem>>, %arg4: memref<1x8x32xf32, #tpu.memory_space<vmem>>, %arg5: memref<32x32xf32, #tpu.memory_space<vmem>>, %arg6: memref<32x32xf32, #tpu.memory_space<vmem>>, %arg7: memref<1x32xf32, #tpu.memory_space<vmem>>, %arg8: memref<32x128xf32, #tpu.memory_space<vmem>>, %arg9: memref<32x128xf32, #tpu.memory_space<vmem>>, %arg10: memref<1x128xf32, #tpu.memory_space<vmem>>, %arg11: memref<1x8x128xf32, #tpu.memory_space<vmem>>, %arg12: memref<1x1x32xf32, #tpu.memory_space<vmem>>, %arg13: memref<1x8x8xf32, #tpu.memory_space<vmem>>, %arg14: memref<8x32xf32, #tpu.memory_space<vmem>>) attributes {dimension_semantics = [#tpu.dimension_semantics<parallel>], iteration_bounds = array<i64: 2>, scalar_prefetch = 0 : i64, scratch_operands = 1 : i64, tpu.core_type = #tpu.core_type<tc>, window_params = [{transform_indices = @transform_0, window_bounds = array<i64: 1, 8, 32>}, {transform_indices = @transform_1, window_bounds = array<i64: 1, 1, 32>}, {transform_indices = @transform_2, window_bounds = array<i64: 1, 32, 8>}, {transform_indices = @transform_3, window_bounds = array<i64: 1, 8, 32>}, {pipeline_mode = #tpu.pipeline_mode<synchronous>, transform_indices = @transform_4, window_bounds = array<i64: 32, 32>}, {pipeline_mode = #tpu.pipeline_mode<synchronous>, transform_indices = @transform_5, window_bounds = array<i64: 32, 32>}, {pipeline_mode = #tpu.pipeline_mode<synchronous>, transform_indices = @transform_6, window_bounds = array<i64: 1, 32>}, {pipeline_mode = #tpu.pipeline_mode<synchronous>, transform_indices = @transform_7, window_bounds = array<i64: 32, 128>}, {pipeline_mode = #tpu.pipeline_mode<synchronous>, transform_indices = @transform_8, window_bounds = array<i64: 32, 128>}, {pipeline_mode = #tpu.pipeline_mode<synchronous>, transform_indices = @transform_9, window_bounds = array<i64: 1, 128>}, {transform_indices = @transform_10, window_bounds = array<i64: 1, 8, 128>}, {transform_indices = @transform_11, window_bounds = array<i64: 1, 1, 32>}, {transform_indices = @transform_12, window_bounds = array<i64: 1, 8, 8>}]} {
    %c0 = arith.constant 0 : index
    %c0_0 = arith.constant 0 : index
    %c0_1 = arith.constant 0 : index
    %0 = vector.load %arg1[%c0, %c0_0, %c0_1] : memref<1x8x32xf32, #tpu.memory_space<vmem>>, vector<1x8x32xf32>
    %1 = vector.shape_cast %0 : vector<1x8x32xf32> to vector<8x32xf32>
    %c0_2 = arith.constant 0 : index
    %c0_3 = arith.constant 0 : index
    %2 = vector.load %arg5[%c0_2, %c0_3] : memref<32x32xf32, #tpu.memory_space<vmem>>, vector<32x32xf32>
    %cst = arith.constant dense<0.000000e+00> : vector<8x32xf32>
    %3 = tpu.matmul %1, %2, %cst {dimension_numbers = #tpu.dot_dimension_numbers<[1], [0], [0], [1], [0, 0, 1, 1], [], []>} : vector<8x32xf32>, vector<32x32xf32>, vector<8x32xf32> -> vector<8x32xf32>
    %c0_4 = arith.constant 0 : index
    %c0_5 = arith.constant 0 : index
    %4 = vector.load %arg7[%c0_4, %c0_5] : memref<1x32xf32, #tpu.memory_space<vmem>>, vector<1x32xf32>
    %5 = vector.broadcast %4 : vector<1x32xf32> to vector<8x32xf32>
    %6 = arith.addf %3, %5 : vector<8x32xf32>
    %c0_6 = arith.constant 0 : index
    %c0_7 = arith.constant 0 : index
    %7 = vector.load %arg6[%c0_6, %c0_7] : memref<32x32xf32, #tpu.memory_space<vmem>>, vector<32x32xf32>
    %c0_8 = arith.constant 0 : index
    %c0_9 = arith.constant 0 : index
    %c0_10 = arith.constant 0 : index
    %8 = vector.load %arg2[%c0_8, %c0_9, %c0_10] : memref<1x1x32xf32, #tpu.memory_space<vmem>>, vector<1x1x32xf32>
    %9 = vector.shape_cast %8 : vector<1x1x32xf32> to vector<1x32xf32>
    %10 = vector.extract_strided_slice %6 {offsets = [0, 0], sizes = [1, 32], strides = [1, 1]} : vector<8x32xf32> to vector<1x32xf32>
    %cst_11 = arith.constant dense<0.000000e+00> : vector<1x32xf32>
    %11 = tpu.matmul %9, %7, %cst_11 {dimension_numbers = #tpu.dot_dimension_numbers<[1], [0], [0], [1], [0, 0, 1, 1], [], []>} : vector<1x32xf32>, vector<32x32xf32>, vector<1x32xf32> -> vector<1x32xf32>
    %12 = arith.addf %10, %11 : vector<1x32xf32>
    %13 = math.tanh %12 : vector<1x32xf32>
    %c0_12 = arith.constant 0 : index
    %c0_13 = arith.constant 0 : index
    %14 = vector.load %arg14[%c0_12, %c0_13] : memref<8x32xf32, #tpu.memory_space<vmem>>, vector<1x32xf32>
    tpu.vector_store %arg14[%c0_12, %c0_13], %13 {strides = array<i32>} : memref<8x32xf32, #tpu.memory_space<vmem>>, vector<1x32xf32>,
    %15 = vector.extract_strided_slice %6 {offsets = [1, 0], sizes = [1, 32], strides = [1, 1]} : vector<8x32xf32> to vector<1x32xf32>
    %cst_14 = arith.constant dense<0.000000e+00> : vector<1x32xf32>
    %16 = tpu.matmul %13, %7, %cst_14 {dimension_numbers = #tpu.dot_dimension_numbers<[1], [0], [0], [1], [0, 0, 1, 1], [], []>} : vector<1x32xf32>, vector<32x32xf32>, vector<1x32xf32> -> vector<1x32xf32>
    %17 = arith.addf %15, %16 : vector<1x32xf32>
    %18 = math.tanh %17 : vector<1x32xf32>
    %c1 = arith.constant 1 : index
    %c0_15 = arith.constant 0 : index
    %19 = vector.load %arg14[%c1, %c0_15] : memref<8x32xf32, #tpu.memory_space<vmem>>, vector<1x32xf32>
    tpu.vector_store %arg14[%c1, %c0_15], %18 {strides = array<i32>} : memref<8x32xf32, #tpu.memory_space<vmem>>, vector<1x32xf32>,
    %20 = vector.extract_strided_slice %6 {offsets = [2, 0], sizes = [1, 32], strides = [1, 1]} : vector<8x32xf32> to vector<1x32xf32>
    %cst_16 = arith.constant dense<0.000000e+00> : vector<1x32xf32>
    %21 = tpu.matmul %18, %7, %cst_16 {dimension_numbers = #tpu.dot_dimension_numbers<[1], [0], [0], [1], [0, 0, 1, 1], [], []>} : vector<1x32xf32>, vector<32x32xf32>, vector<1x32xf32> -> vector<1x32xf32>
    %22 = arith.addf %20, %21 : vector<1x32xf32>
    %23 = math.tanh %22 : vector<1x32xf32>
    %c2 = arith.constant 2 : index
    %c0_17 = arith.constant 0 : index
    %24 = vector.load %arg14[%c2, %c0_17] : memref<8x32xf32, #tpu.memory_space<vmem>>, vector<1x32xf32>
    tpu.vector_store %arg14[%c2, %c0_17], %23 {strides = array<i32>} : memref<8x32xf32, #tpu.memory_space<vmem>>, vector<1x32xf32>,
    %25 = vector.extract_strided_slice %6 {offsets = [3, 0], sizes = [1, 32], strides = [1, 1]} : vector<8x32xf32> to vector<1x32xf32>
    %cst_18 = arith.constant dense<0.000000e+00> : vector<1x32xf32>
    %26 = tpu.matmul %23, %7, %cst_18 {dimension_numbers = #tpu.dot_dimension_numbers<[1], [0], [0], [1], [0, 0, 1, 1], [], []>} : vector<1x32xf32>, vector<32x32xf32>, vector<1x32xf32> -> vector<1x32xf32>
    %27 = arith.addf %25, %26 : vector<1x32xf32>
    %28 = math.tanh %27 : vector<1x32xf32>
    %c3 = arith.constant 3 : index
    %c0_19 = arith.constant 0 : index
    %29 = vector.load %arg14[%c3, %c0_19] : memref<8x32xf32, #tpu.memory_space<vmem>>, vector<1x32xf32>
    tpu.vector_store %arg14[%c3, %c0_19], %28 {strides = array<i32>} : memref<8x32xf32, #tpu.memory_space<vmem>>, vector<1x32xf32>,
    %30 = vector.extract_strided_slice %6 {offsets = [4, 0], sizes = [1, 32], strides = [1, 1]} : vector<8x32xf32> to vector<1x32xf32>
    %cst_20 = arith.constant dense<0.000000e+00> : vector<1x32xf32>
    %31 = tpu.matmul %28, %7, %cst_20 {dimension_numbers = #tpu.dot_dimension_numbers<[1], [0], [0], [1], [0, 0, 1, 1], [], []>} : vector<1x32xf32>, vector<32x32xf32>, vector<1x32xf32> -> vector<1x32xf32>
    %32 = arith.addf %30, %31 : vector<1x32xf32>
    %33 = math.tanh %32 : vector<1x32xf32>
    %c4 = arith.constant 4 : index
    %c0_21 = arith.constant 0 : index
    %34 = vector.load %arg14[%c4, %c0_21] : memref<8x32xf32, #tpu.memory_space<vmem>>, vector<1x32xf32>
    tpu.vector_store %arg14[%c4, %c0_21], %33 {strides = array<i32>} : memref<8x32xf32, #tpu.memory_space<vmem>>, vector<1x32xf32>,
    %35 = vector.extract_strided_slice %6 {offsets = [5, 0], sizes = [1, 32], strides = [1, 1]} : vector<8x32xf32> to vector<1x32xf32>
    %cst_22 = arith.constant dense<0.000000e+00> : vector<1x32xf32>
    %36 = tpu.matmul %33, %7, %cst_22 {dimension_numbers = #tpu.dot_dimension_numbers<[1], [0], [0], [1], [0, 0, 1, 1], [], []>} : vector<1x32xf32>, vector<32x32xf32>, vector<1x32xf32> -> vector<1x32xf32>
    %37 = arith.addf %35, %36 : vector<1x32xf32>
    %38 = math.tanh %37 : vector<1x32xf32>
    %c5 = arith.constant 5 : index
    %c0_23 = arith.constant 0 : index
    %39 = vector.load %arg14[%c5, %c0_23] : memref<8x32xf32, #tpu.memory_space<vmem>>, vector<1x32xf32>
    tpu.vector_store %arg14[%c5, %c0_23], %38 {strides = array<i32>} : memref<8x32xf32, #tpu.memory_space<vmem>>, vector<1x32xf32>,
    %40 = vector.extract_strided_slice %6 {offsets = [6, 0], sizes = [1, 32], strides = [1, 1]} : vector<8x32xf32> to vector<1x32xf32>
    %cst_24 = arith.constant dense<0.000000e+00> : vector<1x32xf32>
    %41 = tpu.matmul %38, %7, %cst_24 {dimension_numbers = #tpu.dot_dimension_numbers<[1], [0], [0], [1], [0, 0, 1, 1], [], []>} : vector<1x32xf32>, vector<32x32xf32>, vector<1x32xf32> -> vector<1x32xf32>
    %42 = arith.addf %40, %41 : vector<1x32xf32>
    %43 = math.tanh %42 : vector<1x32xf32>
    %c6 = arith.constant 6 : index
    %c0_25 = arith.constant 0 : index
    %44 = vector.load %arg14[%c6, %c0_25] : memref<8x32xf32, #tpu.memory_space<vmem>>, vector<1x32xf32>
    tpu.vector_store %arg14[%c6, %c0_25], %43 {strides = array<i32>} : memref<8x32xf32, #tpu.memory_space<vmem>>, vector<1x32xf32>,
    %45 = vector.extract_strided_slice %6 {offsets = [7, 0], sizes = [1, 32], strides = [1, 1]} : vector<8x32xf32> to vector<1x32xf32>
    %cst_26 = arith.constant dense<0.000000e+00> : vector<1x32xf32>
    %46 = tpu.matmul %43, %7, %cst_26 {dimension_numbers = #tpu.dot_dimension_numbers<[1], [0], [0], [1], [0, 0, 1, 1], [], []>} : vector<1x32xf32>, vector<32x32xf32>, vector<1x32xf32> -> vector<1x32xf32>
    %47 = arith.addf %45, %46 : vector<1x32xf32>
    %48 = math.tanh %47 : vector<1x32xf32>
    %c7 = arith.constant 7 : index
    %c0_27 = arith.constant 0 : index
    %49 = vector.load %arg14[%c7, %c0_27] : memref<8x32xf32, #tpu.memory_space<vmem>>, vector<1x32xf32>
    tpu.vector_store %arg14[%c7, %c0_27], %48 {strides = array<i32>} : memref<8x32xf32, #tpu.memory_space<vmem>>, vector<1x32xf32>,
    %c0_28 = arith.constant 0 : index
    %c0_29 = arith.constant 0 : index
    %c0_30 = arith.constant 0 : index
    %50 = vector.load %arg12[%c0_28, %c0_29, %c0_30] : memref<1x1x32xf32, #tpu.memory_space<vmem>>, vector<1x1x32xf32>
    %51 = vector.shape_cast %50 : vector<1x1x32xf32> to vector<1x32xf32>
    %52 = vector.shape_cast %48 : vector<1x32xf32> to vector<1x1x32xf32>
    tpu.vector_store %arg12[%c0_28, %c0_29, %c0_30], %52 {strides = array<i32>} : memref<1x1x32xf32, #tpu.memory_space<vmem>>, vector<1x1x32xf32>,
    %c0_31 = arith.constant 0 : index
    %c0_32 = arith.constant 0 : index
    %53 = vector.load %arg14[%c0_31, %c0_32] : memref<8x32xf32, #tpu.memory_space<vmem>>, vector<8x32xf32>
    %c0_33 = arith.constant 0 : index
    %c0_34 = arith.constant 0 : index
    %c0_35 = arith.constant 0 : index
    %54 = vector.load %arg3[%c0_33, %c0_34, %c0_35] : memref<1x32x8xf32, #tpu.memory_space<vmem>>, vector<1x32x8xf32>
    %55 = vector.shape_cast %54 : vector<1x32x8xf32> to vector<32x8xf32>
    %cst_36 = arith.constant dense<0.000000e+00> : vector<8x8xf32>
    %56 = tpu.matmul %53, %55, %cst_36 {dimension_numbers = #tpu.dot_dimension_numbers<[1], [0], [0], [1], [0, 0, 1, 1], [], []>} : vector<8x32xf32>, vector<32x8xf32>, vector<8x8xf32> -> vector<8x8xf32>
    %cst_37 = arith.constant dense<0xFF800000> : vector<8xf32>
    %57 = vector.multi_reduction <maximumf>, %56, %cst_37 [1] : vector<8x8xf32> to vector<8xf32>
    %58 = vector.shape_cast %57 : vector<8xf32> to vector<8x1xf32>
    %59 = vector.broadcast %58 : vector<8x1xf32> to vector<8x8xf32>
    %60 = arith.subf %56, %59 : vector<8x8xf32>
    %61 = math.exp %60 : vector<8x8xf32>
    %cst_38 = arith.constant dense<0.000000e+00> : vector<8xf32>
    %62 = vector.multi_reduction <add>, %61, %cst_38 [1] : vector<8x8xf32> to vector<8xf32>
    %63 = vector.shape_cast %62 : vector<8xf32> to vector<8x1xf32>
    %64 = tpu.reciprocal %63 : vector<8x1xf32> -> vector<8x1xf32>
    %65 = vector.broadcast %64 : vector<8x1xf32> to vector<8x8xf32>
    %66 = arith.mulf %61, %65 : vector<8x8xf32>
    %c0_39 = arith.constant 0 : index
    %c0_40 = arith.constant 0 : index
    %c0_41 = arith.constant 0 : index
    %67 = vector.load %arg4[%c0_39, %c0_40, %c0_41] : memref<1x8x32xf32, #tpu.memory_space<vmem>>, vector<1x8x32xf32>
    %68 = vector.shape_cast %67 : vector<1x8x32xf32> to vector<8x32xf32>
    %cst_42 = arith.constant dense<0.000000e+00> : vector<8x32xf32>
    %69 = tpu.matmul %66, %68, %cst_42 {dimension_numbers = #tpu.dot_dimension_numbers<[1], [0], [0], [1], [0, 0, 1, 1], [], []>} : vector<8x8xf32>, vector<8x32xf32>, vector<8x32xf32> -> vector<8x32xf32>
    %c0_43 = arith.constant 0 : index
    %c0_44 = arith.constant 0 : index
    %70 = vector.load %arg8[%c0_43, %c0_44] : memref<32x128xf32, #tpu.memory_space<vmem>>, vector<32x128xf32>
    %cst_45 = arith.constant dense<0.000000e+00> : vector<8x128xf32>
    %71 = tpu.matmul %53, %70, %cst_45 {dimension_numbers = #tpu.dot_dimension_numbers<[1], [0], [0], [1], [0, 0, 1, 1], [], []>} : vector<8x32xf32>, vector<32x128xf32>, vector<8x128xf32> -> vector<8x128xf32>
    %c0_46 = arith.constant 0 : index
    %c0_47 = arith.constant 0 : index
    %72 = vector.load %arg9[%c0_46, %c0_47] : memref<32x128xf32, #tpu.memory_space<vmem>>, vector<32x128xf32>
    %cst_48 = arith.constant dense<0.000000e+00> : vector<8x128xf32>
    %73 = tpu.matmul %69, %72, %cst_48 {dimension_numbers = #tpu.dot_dimension_numbers<[1], [0], [0], [1], [0, 0, 1, 1], [], []>} : vector<8x32xf32>, vector<32x128xf32>, vector<8x128xf32> -> vector<8x128xf32>
    %74 = arith.addf %71, %73 : vector<8x128xf32>
    %c0_49 = arith.constant 0 : index
    %c0_50 = arith.constant 0 : index
    %75 = vector.load %arg10[%c0_49, %c0_50] : memref<1x128xf32, #tpu.memory_space<vmem>>, vector<1x128xf32>
    %76 = vector.broadcast %75 : vector<1x128xf32> to vector<8x128xf32>
    %77 = arith.addf %74, %76 : vector<8x128xf32>
    %c0_51 = arith.constant 0 : index
    %c0_52 = arith.constant 0 : index
    %c0_53 = arith.constant 0 : index
    %78 = vector.load %arg11[%c0_51, %c0_52, %c0_53] : memref<1x8x128xf32, #tpu.memory_space<vmem>>, vector<1x8x128xf32>
    %79 = vector.shape_cast %78 : vector<1x8x128xf32> to vector<8x128xf32>
    %80 = vector.shape_cast %77 : vector<8x128xf32> to vector<1x8x128xf32>
    tpu.vector_store %arg11[%c0_51, %c0_52, %c0_53], %80 {strides = array<i32>} : memref<1x8x128xf32, #tpu.memory_space<vmem>>, vector<1x8x128xf32>,
    %c0_54 = arith.constant 0 : index
    %c0_55 = arith.constant 0 : index
    %c0_56 = arith.constant 0 : index
    %81 = vector.load %arg13[%c0_54, %c0_55, %c0_56] : memref<1x8x8xf32, #tpu.memory_space<vmem>>, vector<1x8x8xf32>
    %82 = vector.shape_cast %81 : vector<1x8x8xf32> to vector<8x8xf32>
    %83 = vector.shape_cast %66 : vector<8x8xf32> to vector<1x8x8xf32>
    tpu.vector_store %arg13[%c0_54, %c0_55, %c0_56], %83 {strides = array<i32>} : memref<1x8x8xf32, #tpu.memory_space<vmem>>, vector<1x8x8xf32>,
    return
  }
  func.func @transform_0(%arg0: i32) -> (i32, i32, i32) {
    %c0_i32 = arith.constant 0 : i32
    %c0_i32_0 = arith.constant 0 : i32
    %c0_i32_1 = arith.constant 0 : i32
    return %arg0, %c0_i32, %c0_i32_0 : i32, i32, i32
  }
  func.func @transform_1(%arg0: i32) -> (i32, i32, i32) {
    %c0_i32 = arith.constant 0 : i32
    %c0_i32_0 = arith.constant 0 : i32
    %c0_i32_1 = arith.constant 0 : i32
    return %arg0, %c0_i32, %c0_i32_0 : i32, i32, i32
  }
  func.func @transform_2(%arg0: i32) -> (i32, i32, i32) {
    %c0_i32 = arith.constant 0 : i32
    %c0_i32_0 = arith.constant 0 : i32
    %c0_i32_1 = arith.constant 0 : i32
    return %arg0, %c0_i32, %c0_i32_0 : i32, i32, i32
  }
  func.func @transform_3(%arg0: i32) -> (i32, i32, i32) {
    %c0_i32 = arith.constant 0 : i32
    %c0_i32_0 = arith.constant 0 : i32
    %c0_i32_1 = arith.constant 0 : i32
    return %arg0, %c0_i32, %c0_i32_0 : i32, i32, i32
  }
  func.func @transform_4(%arg0: i32) -> (i32, i32) {
    %c0_i32 = arith.constant 0 : i32
    %c0_i32_0 = arith.constant 0 : i32
    %c0_i32_1 = arith.constant 0 : i32
    return %c0_i32, %c0_i32_0 : i32, i32
  }
  func.func @transform_5(%arg0: i32) -> (i32, i32) {
    %c0_i32 = arith.constant 0 : i32
    %c0_i32_0 = arith.constant 0 : i32
    %c0_i32_1 = arith.constant 0 : i32
    return %c0_i32, %c0_i32_0 : i32, i32
  }
  func.func @transform_6(%arg0: i32) -> (i32, i32) {
    %c0_i32 = arith.constant 0 : i32
    %c0_i32_0 = arith.constant 0 : i32
    %c0_i32_1 = arith.constant 0 : i32
    return %c0_i32, %c0_i32_0 : i32, i32
  }
  func.func @transform_7(%arg0: i32) -> (i32, i32) {
    %c0_i32 = arith.constant 0 : i32
    %c0_i32_0 = arith.constant 0 : i32
    %c0_i32_1 = arith.constant 0 : i32
    return %c0_i32, %c0_i32_0 : i32, i32
  }
  func.func @transform_8(%arg0: i32) -> (i32, i32) {
    %c0_i32 = arith.constant 0 : i32
    %c0_i32_0 = arith.constant 0 : i32
    %c0_i32_1 = arith.constant 0 : i32
    return %c0_i32, %c0_i32_0 : i32, i32
  }
  func.func @transform_9(%arg0: i32) -> (i32, i32) {
    %c0_i32 = arith.constant 0 : i32
    %c0_i32_0 = arith.constant 0 : i32
    %c0_i32_1 = arith.constant 0 : i32
    return %c0_i32, %c0_i32_0 : i32, i32
  }
  func.func @transform_10(%arg0: i32) -> (i32, i32, i32) {
    %c0_i32 = arith.constant 0 : i32
    %c0_i32_0 = arith.constant 0 : i32
    %c0_i32_1 = arith.constant 0 : i32
    return %arg0, %c0_i32, %c0_i32_0 : i32, i32, i32
  }
  func.func @transform_11(%arg0: i32) -> (i32, i32, i32) {
    %c0_i32 = arith.constant 0 : i32
    %c0_i32_0 = arith.constant 0 : i32
    %c0_i32_1 = arith.constant 0 : i32
    return %arg0, %c0_i32, %c0_i32_0 : i32, i32, i32
  }
  func.func @transform_12(%arg0: i32) -> (i32, i32, i32) {
    %c0_i32 = arith.constant 0 : i32
    %c0_i32_0 = arith.constant 0 : i32
    %c0_i32_1 = arith.constant 0 : i32
    return %arg0, %c0_i32, %c0_i32_0 : i32, i32, i32
  }
}

</mosaic_0001>

<bundles_post_ra>
// kernel: tpu_custom_call.1
= control target key start
LH: loop header
LB: loop body
LE: loop exit
PB: predicated region body
PF: predicated region fallthrough
CT: control target
= control target key end

     0   :  { %s2991_s0 = inlined_call_operand.hbm [shape: f32[2,8,32], index: 0, kind: input, shape index: {}]   ;;  %s2992_s1 = inlined_call_operand.vmem [shape: f32[2,1,32], index: 1, kind: input, shape index: {}]   ;;  %s2993_s2 = inlined_call_operand.vmem [shape: f32[2,32,8], index: 2, kind: input, shape index: {}]   ;;  %s2994_s3 = inlined_call_operand.hbm [shape: f32[2,8,32], index: 3, kind: input, shape index: {}]   ;;  %s2995_s4 = inlined_call_operand.vmem [shape: f32[32,32], index: 4, kind: input, shape index: {}]   ;;  %s2996_s5 = inlined_call_operand.vmem [shape: f32[32,32], index: 5, kind: input, shape index: {}]   ;;  %s2997_s6 = inlined_call_operand.vmem [shape: f32[1,32], index: 6, kind: input, shape index: {}]   ;;  %s2998_s7 = inlined_call_operand.vmem [shape: f32[32,128], index: 7, kind: input, shape index: {}]   ;;  %s2999_s8 = inlined_call_operand.hbm [shape: f32[32,128], index: 8, kind: input, shape index: {}]   ;;  %s3000_s9 = inlined_call_operand.vmem [shape: f32[1,128], index: 9, kind: input, shape index: {}]   ;;  %s3001_s10 = inlined_call_operand.hbm [shape: f32[2,8,128], index: 10, kind: output, shape index: {0}]   ;;  %s3002_s11 = inlined_call_operand.hbm [shape: f32[2,1,32], index: 11, kind: output, shape index: {1}]   ;;  %s3003_s12 = inlined_call_operand.hbm [shape: f32[2,8,8], index: 12, kind: output, shape index: {2}]  }
   0x1   :  { %3016 = sst [smem:[#allocation23_spill]] %s2999_s8 }
   0x2   :  { %3017 = sst [smem:[#allocation24_spill]] %s3000_s9 }
   0x3   :  { %3018 = sst [smem:[#allocation25_spill]] %s3001_s10 }
   0x4   :  { %3019 = sst [smem:[#allocation26_spill]] %s3003_s12 }
   0x5   :  { %18 = vsyncpa [#allocation4], 0 }
   0x6   :  { %20 = vsyncpa [#allocation4 + $0x1], 0 }
   0x7   :  { %21 = vsyncpa [#allocation7], 0 }
   0x8   :  { %23 = vsyncpa [#allocation7 + $0x1], 0 }
   0x9   :  { %24 = vsyncpa [#allocation5], 0 }
   0xa   :  { %26 = vsyncpa [#allocation5 + $0x1], 0 }
   0xb   :  { %27 = vsyncpa [#allocation11], 0 }
   0xc   :  { %29 = vsyncpa [#allocation11 + $0x1], 0  ;;  %s2527_s21 = smov 0   ;;  %s2529_s22 = smov 0  }
   0xd   :  { %s2531_s23 = smov 0   ;;  %s2533_s24 = smov 0  }
   0xe LB: > { %3020 = sst [smem:[#allocation18_spill]] %s2437_s21  ;;  %s2548_s25 = sadd.s32 4294967295, %s2449_s24   ;;  %s2449_s24 = sphi %s2533_s24, %s3046_s24   ;;  %s2445_s23 = sphi %s2531_s23, %s3048_s23   ;;  %s2441_s22 = sphi %s2529_s22, %s3050_s22   ;;  %s2437_s21 = sphi %s2527_s21, %s3049_s21  }
   0xf   : > { %3021 = sst [smem:[#allocation19_spill]] %s2445_s23  ;;  %s3004_s26 = sadd.s32 4294967294, %s2449_s24  }
  0x10   : > { %p55_p0 = scmp.ne.s32.totalorder %s2441_s22, %s2437_s21  ;;  %p3009_p1 = scmp.eq.s32.totalorder %s2548_s25, 0 }
  0x11   : > { %p289_p3 = scmp.eq.s32.totalorder %s3004_s26, 1  ;;  %p1821_p5 = scmp.ge.s32.totalorder %s2449_s24, 1 }
  0x12   : > { %p2559_p4 = por %p3009_p1, %p55_p0  ;;  %p348_p7 = scmp.lt.s32.totalorder %s2449_s24, 3 }
  0x13   : > { %p2564_p6 = por %p289_p3, %p55_p0  ;;  %s2451_s30 = smov [#allocation8]  }
  0x14   : > { %s3022_s27 = scalar_select %p2559_p4, 1, 0 }
  0x15   : > { %s3023_s28 = scalar_select %p2564_p6, 1, 0 }
  0x16   : > { %p2569_p8 = pnand %p1821_p5, %p348_p7  ;;  %s372_s13 = sshll.u32 %s2451_s30, 4  ;;  %s2573_s13 = int_to_ptr.vmem [resolvable:$true] %s372_s13 }
  0x17   : > { %3024 = sst [smem:[#allocation20_spill]] %s3023_s28  ;;  %s2585_s15 = sadd.s32 1, %s2449_s24  }
  0x18   : > { %s3025_s29 = scalar_select %p2569_p8, 1, 0 }
  0x19   : > { %p2144_p9 = pneg %p2569_p8  ;;  %3027 = sst [smem:[#allocation21_spill]] %s2585_s15 }
  0x1a   : > { %s42_s16 = sadd.s32 1, %s2445_s23  ;;  %s39_s17 = ssub.s32 %s2449_s24, %s2585_s15 }
  0x1b   : > { %p2580_p11 = pnand %p2144_p9, %p3009_p1  ;;  %s3028_s8 = sld [smem:[#allocation23_spill]] }
  0x1d   : > { %p2229_p13 = pneg %p2580_p11 }
  0x21   : > { %s2227_s20 = scalar_lea.hbm %s3028_s8, 512 }
  0x22   : > { %p2228_p12 = scmp.ne.s32.totalorder %s3028_s8, %s2227_s20  ;;  %p2234_p5 = scmp.lt.u32.totalorder %s2227_s20, %s3028_s8 }
  0x24   : > { %p2230_p0 = pnand %p2229_p13, %p2228_p12 }
  0x26   : > { %p2231_p3 = pneg %p2230_p0 }
  0x28   : > { %p2236_p7 = pnand %p2234_p5, %p2231_p3 }
  0x2a   : > { %2239 = shalt.err (!%p2236_p7)
}
  0x2b   : > { %s2240_s15 = scalar_lea.vmem %s2573_s13, 512  ;;  %p2248_p2 = scmp.lt.s32.totalorder %s2573_s13, %s2573_s13 }
  0x2c   : > { %p2241_p9 = scmp.ne.s32.totalorder %s2573_s13, %s2240_s15  ;;  %p2249_p6 = scmp.lt.s32.totalorder %s2240_s15, %s2240_s15 }
  0x2e   : > { %p2243_p10 = pnand %p2241_p9, %p2229_p13  ;;  %p2250_p4 = por %p2249_p6, %p2248_p2 }
  0x30   : > { %p2244_p1 = pneg %p2243_p10 }
  0x32   : > { %p2251_p8 = pnand %p2250_p4, %p2244_p1 }
  0x34   : > { %2254 = shalt.err (!%p2251_p8)
}
  0x35   : > { %s2452_s26 = smov 128   ;;  %s2453_s21 = smov 8  }
  0x36   : > { %2147 = dma.hbm_to_vmem [thread:$0]  (!%p2580_p11), %s3028_s8, 512, %s2573_s13, [#allocation7], %s2452_s26, %s2452_s26, %s2453_s21  }
  0x37   : > { %p40_p2 = scmp.eq.s32.totalorder %s39_s17, 0  ;;  %p49_p1 = scmp.ne.s32.totalorder %s2445_s23, %s2441_s22 }
  0x38   : > { %p50_p4 = scmp.eq.s32.totalorder %s2449_s24, 0  ;;  %p2166_p6 = scmp.lt.s32.totalorder %s2449_s24, 2 }
  0x39   : > { %s2616_s15 = scalar_select %p40_p2, %s2445_s23, %s42_s16  }
  0x3a   : > { %p51_p8 = por %p50_p4, %p49_p1  ;;  %p3030_p10 = scmp.eq.s32.totalorder %s2548_s25, 1 }
  0x3b   : > { %3029 = sst [smem:[#allocation22_spill]] %s2616_s15  ;;  %s389_s20 = sand.u32 1, %s2445_s23  }
  0x3c   : > { %p2620_p12 = por %p3030_p10, %p49_p1  ;;  %s1825_s30 = sshll.u32 %s2449_s24, 7 }
  0x3d   : > { %s2626_s10 = sshll.u32 %s389_s20, 3  ;;  %s2631_s13 = scalar_lea.hbm %s2991_s0, %s1825_s30 }
  0x3e   : > { %s3031_s19 = scalar_select %p2620_p12, 1, 0 }
  0x3f   : > { %s393_s16 = scalar_lea.vmem [#allocation3], %s2626_s10  ;;  %p2634_p11 = pnand %p2166_p6, %p51_p8 }
  0x40   : > { %s400_s17 = sshll.u32 %s393_s16, 4  ;;  %s2643_s9 = scalar_lea.hbm %s2994_s3, %s1825_s30  ;;  %s2638_s17 = int_to_ptr.vmem [resolvable:$true] %s400_s17 }
  0x41   : > { %s390_s18 = scalar_lea.sflag [#allocation4], %s389_s20  ;;  %s2255_s14 = scalar_lea.hbm %s2631_s13, 128 }
  0x42   : > { %p2256_p13 = scmp.ne.s32.totalorder %s2631_s13, %s2255_s14  ;;  %p2257_p0 = pneg %p2634_p11 }
  0x43   : > { %s2260_s15 = scalar_lea.hbm %s2991_s0, 256  ;;  %p2261_p7 = scmp.lt.u32.totalorder %s2631_s13, %s2991_s0 }
  0x44   : > { %p2258_p3 = pnand %p2257_p0, %p2256_p13  ;;  %p2262_p9 = scmp.lt.u32.totalorder %s2260_s15, %s2255_s14 }
  0x45   : > { %p2264_p1 = scmp.lt.u32.totalorder %s2255_s14, %s2631_s13 }
  0x46   : > { %p2259_p5 = pneg %p2258_p3  ;;  %p2263_p2 = por %p2262_p9, %p2261_p7 }
  0x48   : > { %p2265_p4 = por %p2264_p1, %p2263_p2 }
  0x4a   : > { %p2266_p6 = pnand %p2265_p4, %p2259_p5 }
  0x4c   : > { %2269 = shalt.err (!%p2266_p6)
}
  0x4d   : > { %s2270_s20 = scalar_lea.vmem %s2638_s17, 128  ;;  %s2454_s8 = smov [#allocation3]  }
  0x4e   : > { %p2271_p8 = scmp.ne.s32.totalorder %s2638_s17, %s2270_s20  ;;  %s2275_s30 = sshll.u32 %s2454_s8, 4  ;;  %s2276_s30 = int_to_ptr.vmem [resolvable:$false] %s2275_s30 }
  0x4f   : > { %s2277_s12 = scalar_lea.vmem %s2276_s30, 256  ;;  %p2278_p3 = scmp.lt.s32.totalorder %s2638_s17, %s2276_s30 }
  0x50   : > { %p2273_p10 = pnand %p2271_p8, %p2257_p0  ;;  %p2279_p7 = scmp.lt.s32.totalorder %s2277_s12, %s2270_s20 }
  0x52   : > { %p2274_p13 = pneg %p2273_p10  ;;  %p2280_p9 = por %p2279_p7, %p2278_p3 }
  0x54   : > { %p2281_p2 = pnand %p2280_p9, %p2274_p13 }
  0x56   : > { %2284 = shalt.err (!%p2281_p2)
}
  0x57   : > { %2151 = dma.hbm_to_vmem [thread:$0]  (!%p2634_p11), %s2631_s13, 128, %s2638_s17, %s390_s18  }
  0x58   : > { %s421_s23 = sand.u32 1, %s2449_s24   ;;  %s425_s15 = scalar_lea.vmem [#allocation6], %s2626_s10 }
  0x59   : > { %s432_s21 = sshll.u32 %s425_s15, 4  ;;  %s422_s28 = scalar_lea.sflag [#allocation7], %s421_s23  ;;  %s433_s21 = int_to_ptr.vmem [resolvable:$true] %s432_s21 }
  0x5a   : > { %s2285_s14 = scalar_lea.hbm %s2643_s9, 128  ;;  %s2290_s8 = scalar_lea.hbm %s2994_s3, 256 }
  0x5b   : > { %p2286_p5 = scmp.ne.s32.totalorder %s2643_s9, %s2285_s14  ;;  %p2291_p6 = scmp.lt.u32.totalorder %s2643_s9, %s2994_s3 }
  0x5c   : > { %p2292_p8 = scmp.lt.u32.totalorder %s2290_s8, %s2285_s14  ;;  %p2294_p13 = scmp.lt.u32.totalorder %s2285_s14, %s2643_s9 }
  0x5d   : > { %p2288_p1 = pnand %p2286_p5, %p2257_p0 }
  0x5e   : > { %p2293_p10 = por %p2292_p8, %p2291_p6 }
  0x5f   : > { %p2289_p4 = pneg %p2288_p1 }
  0x60   : > { %p2295_p3 = por %p2294_p13, %p2293_p10 }
  0x62   : > { %p2296_p7 = pnand %p2295_p3, %p2289_p4 }
  0x64   : > { %2299 = shalt.err (!%p2296_p7)
}
  0x65   : > { %s2300_s10 = scalar_lea.vmem %s433_s21, 128  ;;  %s2455_s13 = smov [#allocation6]  }
  0x66   : > { %p2301_p9 = scmp.ne.s32.totalorder %s433_s21, %s2300_s10  ;;  %s2305_s17 = sshll.u32 %s2455_s13, 4  ;;  %s2306_s17 = int_to_ptr.vmem [resolvable:$false] %s2305_s17 }
  0x67   : > { %s2307_s18 = scalar_lea.vmem %s2306_s17, 256  ;;  %p2308_p1 = scmp.lt.s32.totalorder %s433_s21, %s2306_s17 }
  0x68   : > { %p2303_p2 = pnand %p2301_p9, %p2257_p0  ;;  %p2309_p12 = scmp.lt.s32.totalorder %s2307_s18, %s2300_s10 }
  0x6a   : > { %p2304_p5 = pneg %p2303_p2  ;;  %p2310_p6 = por %p2309_p12, %p2308_p1 }
  0x6c   : > { %p2311_p8 = pnand %p2310_p6, %p2304_p5 }
  0x6e   : > { %2314 = shalt.err (!%p2311_p8)
}
  0x6f   : > { %2154 = dma.hbm_to_vmem [thread:$0]  (!%p2634_p11), %s2643_s9, 128, %s433_s21, %s422_s28  }
  0x70   : > { %p3033_p4 = scmp.ne.s32.totalorder %s3025_s29, 0 }
  0x71   : > { %s2694_s23 = sand.u32 (!%p3033_p4), 1, %s2441_s22   ;;  %p3034_p12 = scmp.ne.s32.totalorder (!%p3033_p4), %s3022_s27, 0 }
  0x72   : > { %441 = sbr.rel (%p3033_p4) target bundleno = 2942 (0xb7e), region = 60  ;;  %s2697_s15 = sshll.u32 (!%p3033_p4), %s2694_s23, 3 }
  0x73   : > { %s444_s14 = scalar_lea.sflag (!%p3033_p4), [#allocation4], %s2694_s23  ;;  %s447_s16 = scalar_lea.vmem (!%p3033_p4), [#allocation3], %s2697_s15 }
  0x79   : > { %2416 = dma.done.wait (%p3034_p12), %s444_s14, 128  }
  0x7a   : > { %2418 = vsyncadd (%p3034_p12), %s444_s14, 4294967168  ;;  %s452_s29 = sand.u32 1, %s2548_s25   ;;  %s456_s9 = scalar_lea.vmem [#allocation6], %s2697_s15 }
  0x7b   : > { %s453_s26 = scalar_lea.sflag [#allocation7], %s452_s29 }
  0x7c   : > { %2420 = dma.done.wait (%p3034_p12), %s453_s26, 128  }
  0x7d   : > { %2422 = vsyncadd (%p3034_p12), %s453_s26, 4294967168  ;;  %p3035_p11 = scmp.eq.s32.totalorder %s2548_s25, 0 }
  0x7f   : > { %2424 = dma.done.wait (%p3035_p11), [#allocation7], 512   ;;  %p3036_p0 = pmov %p3035_p11 }
  0x80   : > { %v2456_v0 = vmov 0.0|0.0   ;;  %vm2457_vm0 = vmmov 0   ;;  %v2458_v1 = vmov 0.0   ;;  %p523_p10 = scmp.lt.s32.totalorder %s2548_s25, 1  ;;  %v532_v2 = vld [vmem:[%s2995_s4] sm:$0xff]  ;;  %v533_v3 = vld [vmem:[%s2995_s4 + $0x8] sm:$0xff] }
  0x81   : > { %2426 = vsyncadd (%p3036_p0), [#allocation7], 4294966784  ;;  %2058 = vmatprep.subr.bf16.mxu0 %v2456_v0  ;;  %2064 = vmatprep.subr.bf16.mxu1 %v2456_v0  ;;  %v617_v4 = vld [vmem:[%s2996_s5] sm:$0xff]  ;;  %v2059_v5 = vpack.c.bf16 %v533_v3, %v532_v2  ;;  %v618_v6 = vld [vmem:[%s2996_s5 + $0x8] sm:$0xff]  ;;  %vm543_vm1 = vcmask 261120   ;;  %vm697_vm2 = vcmask 253952  }
  0x82   : > { %1929 = vmatprep.mubr.msk.f32.mxu0 %vm2457_vm0, %v2458_v1  ;;  %1940 = vmatprep.mubr.msk.f32.mxu1 %vm2457_vm0, %v2458_v1  ;;  %v534_v7 = vld [vmem:[%s2995_s4 + $0x10] sm:$0xff]  ;;  %v535_v8 = vld [vmem:[%s2995_s4 + $0x18] sm:$0xff]  ;;  %s2743_s26 = scalar_select %p523_p10, %s2548_s25, 1  ;;  %v2745_v9 = vpack.c.bf16 %v618_v6, %v617_v4  ;;  %v1836_v16 = vld [vmem:[%s2997_s6] ss:$0 sm:$0xff]  ;;  %vm777_vm3 = vcmask 254977  }
  0x83   : > { %v619_v10 = vld [vmem:[%s2996_s5 + $0x10] sm:$0xff]  ;;  %v620_v11 = vld [vmem:[%s2996_s5 + $0x18] sm:$0xff]  ;;  %2060 = vmatpush3.bf16.msra.mxu0 %v2059_v5  ;;  %v2062_v12 = vpack.c.bf16 %v535_v8, %v534_v7  ;;  %vm858_vm4 = vcmask 256002   ;;  %vm939_vm5 = vcmask 257027   ;;  %vm1020_vm6 = vcmask 258052   ;;  %s1854_s10 = sshll.u32 %s2548_s25, 4 }
  0x84   : > { %2066 = vmatpush3.bf16.msra.mxu1 %v2745_v9  ;;  %2061 = vmatprep.subr.bf16.mxu0 %v2456_v0  ;;  %v2755_v13 = vpack.c.bf16 %v620_v11, %v619_v10  ;;  %s525_s12 = scalar_lea.vmem %s2992_s1, %s2743_s26  ;;  %v531_v14 = vld [vmem:[%s447_s16] sm:$0xff]  ;;  %vm1101_vm7 = vcmask 259077   ;;  %vm1182_vm8 = vcmask 260102   ;;  %s1858_s13 = sshll.u32 %s2743_s26, 5  ;;  %vm1263_vm9 = vcmask 261127  }
  0x85   : > { %2067 = vmatprep.subr.bf16.mxu1 %v2456_v0  ;;  %v621_v15 = vld [vmem:[%s525_s12] sm:$0x1]  ;;  %s530_s14 = scalar_lea.vmem %s2993_s2, %s1858_s13  ;;  %s515_s26 = scalar_lea.vmem [#allocation10], %s2694_s23  ;;  %vm1344_vm10 = vcmask 64512  }
  0x86   : > { %v1267_v60 = vld [vmem:[%s530_s14] sm:$0xff]  ;;  %v1268_v61 = vld [vmem:[%s530_s14 + $0x8] sm:$0xff]  ;;  %v1269_v63 = vld [vmem:[%s530_s14 + $0x10] sm:$0xff]  ;;  %s522_s16 = scalar_lea.vmem [#allocation12], %s2697_s15  ;;  %s2881_s18 = scalar_lea.hbm %s3002_s11, %s1854_s10 }
  0x87   : > { %2063 = vmatpush3.bf16.msra.mxu0 %v2062_v12  ;;  %v2113_v62 = vpack.c.bf16 %v1268_v61, %v1267_v60  ;;  %v1270_v2 = vld [vmem:[%s530_s14 + $0x18] sm:$0xff]  ;;  %s1627_s14 = sshll.u32 %s515_s26, 4  ;;  %s2887_s27 = scalar_lea.sflag [#allocation11], %s452_s29  ;;  %s1628_s14 = int_to_ptr.vmem [resolvable:$true] %s1627_s14 }
  0x88   : > { %2069 = vmatpush3.bf16.msra.mxu1 %v2755_v13  ;;  %2070 = vmatprep.subr.bf16.mxu0 %v2456_v0  ;;  %v2116_v3 = vpack.c.bf16 %v1270_v2, %v1269_v63  ;;  %s2315_s21 = scalar_lea.vmem %s1628_s14, 16  ;;  %p3037_p3 = scmp.ne.s32.totalorder %s3031_s19, 0 }
  0x89   : > { %2076 = vmatprep.subr.bf16.mxu1 %v2456_v0  ;;  %p2316_p13 = scmp.ne.s32.totalorder %s1628_s14, %s2315_s21 }
  0x8a   : > { %1930 = vmatmul.mubr.msk.f32.vlgmr.msra.gmra.mrb[0].mxu0 %vm543_vm1, %v531_v14 }
  0x8b   : > { %1941 = vmatmul.mubr.msk.f32.vlgmr.msra.gmra.mrb[0].mxu1 %vm543_vm1, %v621_v15  ;;  %2072 = vmatpush3.bf16.msra.mxu0 %v2745_v9  ;;  %p2317_p7 = pnand %p2316_p13, %p3037_p3 }
  0x8c   : > { %2073 = vmatprep.subr.bf16.mxu0 %v2456_v0  ;;  %1951 = vmatprep.mubr.msk.f32.mxu0 %vm2457_vm0, %v2458_v1 }
  0x8d   : > { %2078 = vmatpush3.bf16.msra.mxu1 %v2745_v9  ;;  %1962 = vmatprep.mubr.msk.f32.mxu1 %vm2457_vm0, %v2458_v1  ;;  %p2318_p9 = pneg %p2317_p7 }
  0x8e   : > { %2079 = vmatprep.subr.bf16.mxu1 %v2456_v0 }
  0x8f   : > { %2075 = vmatpush3.bf16.msra.mxu0 %v2755_v13 }
  0x90   : > { %2082 = vmatprep.subr.bf16.mxu0 %v2456_v0 }
  0x91   : > { %2081 = vmatpush3.bf16.msra.mxu1 %v2755_v13 }
  0x92   : > { %2088 = vmatprep.subr.bf16.mxu1 %v2456_v0 }
 0x15d   : > { %v613_v17 = vpop.f32.mrb[0].mxu0 }
 0x15e   : > { %v2784_v18 = vadd.f32 %v1836_v16, %v613_v17  ;;  %v1931_v19 = vpop.f32.mrb[1].mxu0  ;;  %v691_v20 = vpop.f32.mrb[0].mxu1 }
 0x15f   : > { %v1942_v21 = vpop.f32.mrb[1].mxu1  ;;  %v1434_v19 = vld [vmem:[#allocation8] sm:$0xff] }
 0x160   : > { %v695_v22 = vadd.f32 %v691_v20, %v2784_v18  ;;  %v1435_v20 = vld [vmem:[#allocation8 + $0x8] sm:$0xff]  ;;  %v1436_v21 = vld [vmem:[#allocation8 + $0x10] sm:$0xff] }
 0x162   : > { %2207 = vtanh.f32 %v695_v22  ;;  %v2119_v22 = vpack.c.bf16 %v1435_v20, %v1434_v19 }
 0x16c   : > { %v2208_v23 = vpop.eup %2207 }
 0x16d   : > { %698 = vst.msk [vmem:[#allocation2] sm:$0x1] %vm697_vm2, %v2208_v23  ;;  %1952 = vmatmul.mubr.msk.f32.vlgmr.msra.gmra.mrb[2].mxu0 %vm543_vm1, %v2208_v23  ;;  %v1437_v23 = vld [vmem:[#allocation8 + $0x18] sm:$0xff] }
 0x16e   : > { %2084 = vmatpush3.bf16.msra.mxu0 %v2745_v9  ;;  %1973 = vmatprep.mubr.msk.f32.mxu0 %vm2457_vm0, %v2458_v1 }
 0x16f   : > { %2085 = vmatprep.subr.bf16.mxu0 %v2456_v0 }
 0x172   : > { %2087 = vmatpush3.bf16.msra.mxu0 %v2755_v13 }
 0x173   : > { %2094 = vmatprep.subr.bf16.mxu0 %v2456_v0 }
 0x240   : > { %v768_v24 = vpop.f32.mrb[2].mxu0 }
 0x241   : > { %v773_v25 = vrot.slane %v768_v24, 7  ;;  %v1953_v26 = vpop.f32.mrb[3].mxu0  ;;  %v2122_v24 = vpack.c.bf16 %v1437_v23, %v1436_v21 }
 0x242   : > { %v1430_v26 = vld [vmem:[%s2998_s7] sm:$0xff] }
 0x243   : > { %v775_v27 = vadd.f32 %v773_v25, %v2784_v18 }
 0x245   : > { %2209 = vtanh.f32 %v775_v27  ;;  %v1431_v27 = vld [vmem:[%s2998_s7 + $0x8] sm:$0xff] }
 0x24f   : > { %v2210_v28 = vpop.eup %2209 }
 0x250   : > { %778 = vst.msk [vmem:[#allocation2] sm:$0x2] %vm777_vm3, %v2210_v28  ;;  %v780_v29 = vrot.slane %v2210_v28, 1 }
 0x252   : > { %1963 = vmatmul.mubr.msk.f32.vlgmr.msra.gmra.mrb[2].mxu1 %vm543_vm1, %v780_v29  ;;  %v2125_v29 = vpack.c.bf16 %v1431_v27, %v1430_v26 }
 0x253   : > { %2090 = vmatpush3.bf16.msra.mxu1 %v2745_v9  ;;  %1984 = vmatprep.mubr.msk.f32.mxu1 %vm2457_vm0, %v2458_v1 }
 0x254   : > { %2091 = vmatprep.subr.bf16.mxu1 %v2456_v0 }
 0x257   : > { %2093 = vmatpush3.bf16.msra.mxu1 %v2755_v13 }
 0x258   : > { %2100 = vmatprep.subr.bf16.mxu1 %v2456_v0 }
 0x325   : > { %v849_v30 = vpop.f32.mrb[2].mxu1 }
 0x326   : > { %v854_v31 = vrot.slane %v849_v30, 6  ;;  %v1964_v32 = vpop.f32.mrb[3].mxu1 }
 0x327   : > { %v1433_v32 = vld [vmem:[%s2998_s7 + $0x18] sm:$0xff] }
 0x328   : > { %v856_v33 = vadd.f32 %v854_v31, %v2784_v18  ;;  %v1432_v31 = vld [vmem:[%s2998_s7 + $0x10] sm:$0xff] }
 0x32a   : > { %2211 = vtanh.f32 %v856_v33  ;;  %v2128_v33 = vpack.c.bf16 %v1433_v32, %v1432_v31 }
 0x334   : > { %v2212_v34 = vpop.eup %2211 }
 0x335   : > { %859 = vst.msk [vmem:[#allocation2] sm:$0x4] %vm858_vm4, %v2212_v34  ;;  %v861_v35 = vrot.slane %v2212_v34, 2 }
 0x337   : > { %1974 = vmatmul.mubr.msk.f32.vlgmr.msra.gmra.mrb[4].mxu0 %vm543_vm1, %v861_v35 }
 0x338   : > { %2096 = vmatpush3.bf16.msra.mxu0 %v2745_v9  ;;  %1995 = vmatprep.mubr.msk.f32.mxu0 %vm2457_vm0, %v2458_v1 }
 0x339   : > { %2097 = vmatprep.subr.bf16.mxu0 %v2456_v0 }
 0x33c   : > { %2099 = vmatpush3.bf16.msra.mxu0 %v2755_v13 }
 0x33d   : > { %2106 = vmatprep.subr.bf16.mxu0 %v2456_v0 }
 0x40a   : > { %v930_v36 = vpop.f32.mrb[4].mxu0 }
 0x40b   : > { %v935_v37 = vrot.slane %v930_v36, 5  ;;  %v1975_v38 = vpop.f32.mrb[5].mxu0 }
 0x40d   : > { %v937_v39 = vadd.f32 %v935_v37, %v2784_v18 }
 0x40f   : > { %2213 = vtanh.f32 %v937_v39 }
 0x419   : > { %v2214_v40 = vpop.eup %2213 }
 0x41a   : > { %940 = vst.msk [vmem:[#allocation2] sm:$0x8] %vm939_vm5, %v2214_v40  ;;  %v942_v41 = vrot.slane %v2214_v40, 3 }
 0x41c   : > { %1985 = vmatmul.mubr.msk.f32.vlgmr.msra.gmra.mrb[4].mxu1 %vm543_vm1, %v942_v41 }
 0x41d   : > { %2102 = vmatpush3.bf16.msra.mxu1 %v2745_v9  ;;  %2006 = vmatprep.mubr.msk.f32.mxu1 %vm2457_vm0, %v2458_v1 }
 0x41e   : > { %2103 = vmatprep.subr.bf16.mxu1 %v2456_v0 }
 0x421   : > { %2105 = vmatpush3.bf16.msra.mxu1 %v2755_v13 }
 0x422   : > { %2112 = vmatprep.subr.bf16.mxu1 %v2456_v0 }
 0x4ef   : > { %v1011_v42 = vpop.f32.mrb[4].mxu1 }
 0x4f0   : > { %v1016_v43 = vrot.slane %v1011_v42, 4  ;;  %v1986_v44 = vpop.f32.mrb[5].mxu1 }
 0x4f2   : > { %v1018_v45 = vadd.f32 %v1016_v43, %v2784_v18 }
 0x4f4   : > { %2215 = vtanh.f32 %v1018_v45 }
 0x4fe   : > { %v2216_v46 = vpop.eup %2215 }
 0x4ff   : > { %1021 = vst.msk [vmem:[#allocation2] sm:$0x10] %vm1020_vm6, %v2216_v46  ;;  %v1023_v47 = vrot.slane %v2216_v46, 4 }
 0x501   : > { %1996 = vmatmul.mubr.msk.f32.vlgmr.msra.gmra.mrb[6].mxu0 %vm543_vm1, %v1023_v47 }
 0x502   : > { %2108 = vmatpush3.bf16.msra.mxu0 %v2745_v9  ;;  %2017 = vmatprep.mubr.msk.f32.mxu0 %vm2457_vm0, %v2458_v1 }
 0x503   : > { %2109 = vmatprep.subr.bf16.mxu0 %v2456_v0 }
 0x506   : > { %2111 = vmatpush3.bf16.msra.mxu0 %v2755_v13 }
 0x507   : > { %2031 = vmatprep.subr.mxu0 %v2458_v1 }
 0x5d4   : > { %v1092_v48 = vpop.f32.mrb[6].mxu0 }
 0x5d5   : > { %v1097_v49 = vrot.slane %v1092_v48, 3  ;;  %v1997_v50 = vpop.f32.mrb[7].mxu0 }
 0x5d7   : > { %v1099_v51 = vadd.f32 %v1097_v49, %v2784_v18 }
 0x5d9   : > { %2217 = vtanh.f32 %v1099_v51 }
 0x5e3   : > { %v2218_v52 = vpop.eup %2217 }
 0x5e4   : > { %1102 = vst.msk [vmem:[#allocation2] sm:$0x20] %vm1101_vm7, %v2218_v52  ;;  %v1104_v53 = vrot.slane %v2218_v52, 5 }
 0x5e6   : > { %2007 = vmatmul.mubr.msk.f32.vlgmr.msra.gmra.mrb[6].mxu1 %vm543_vm1, %v1104_v53 }
 0x5e7   : > { %2028 = vmatprep.mubr.msk.f32.mxu1 %vm2457_vm0, %v2458_v1  ;;  %2114 = vmatpush3.bf16.msra.mxu1 %v2113_v62 }
 0x5e8   : > { %2115 = vmatprep.subr.bf16.mxu1 %v2456_v0 }
 0x5eb   : > { %2117 = vmatpush3.bf16.msra.mxu1 %v2116_v3 }
 0x5ec   : > { %2118 = vmatprep.subr.bf16.mxu1 %v2456_v0 }
 0x6b9   : > { %v1173_v54 = vpop.f32.mrb[6].mxu1 }
 0x6ba   : > { %v1178_v55 = vrot.slane %v1173_v54, 2  ;;  %v2008_v56 = vpop.f32.mrb[7].mxu1 }
 0x6bc   : > { %v1180_v57 = vadd.f32 %v1178_v55, %v2784_v18 }
 0x6be   : > { %2219 = vtanh.f32 %v1180_v57 }
 0x6c8   : > { %v2220_v58 = vpop.eup %2219 }
 0x6c9   : > { %1183 = vst.msk [vmem:[#allocation2] sm:$0x40] %vm1182_vm8, %v2220_v58  ;;  %v1185_v59 = vrot.slane %v2220_v58, 6 }
 0x6cb   : > { %2018 = vmatmul.mubr.msk.f32.vlgmr.msra.gmra.mrb[8].mxu0 %vm543_vm1, %v1185_v59 }
 0x6cc   : > { %2033 = vmatprep.mubr.msk.f32.mxu0 %vm2457_vm0, %v2458_v1 }
 0x79e   : > { %v1254_v4 = vpop.f32.mrb[8].mxu0 }
 0x79f   : > { %v1259_v5 = vrot.slane %v1254_v4, 1  ;;  %v2019_v6 = vpop.f32.mrb[9].mxu0 }
 0x7a1   : > { %v1261_v7 = vadd.f32 %v1259_v5, %v2784_v18  ;;  %v1356_v18 = vld [vmem:[%s456_s9] sm:$0xff]  ;;  %s2459_s9 = smov [#allocation10]  }
 0x7a2   : > { %2032 = vmatpush3.msra.mxu0 %v1356_v18  ;;  %s2319_s28 = sshll.u32 %s2459_s9, 4  ;;  %s2320_s28 = int_to_ptr.vmem [resolvable:$false] %s2319_s28 }
 0x7a3   : > { %2221 = vtanh.f32 %v1261_v7  ;;  %2124 = vmatprep.subr.bf16.mxu0 %v2456_v0  ;;  %s2321_s20 = scalar_lea.vmem %s2320_s28, 32  ;;  %p2322_p2 = scmp.lt.s32.totalorder %s1628_s14, %s2320_s28 }
 0x7a4   : > { %p2323_p5 = scmp.lt.s32.totalorder %s2321_s20, %s2315_s21 }
 0x7a6   : > { %p2324_p1 = por %p2323_p5, %p2322_p2 }
 0x7a8   : > { %p2325_p6 = pnand %p2324_p1, %p2318_p9 }
 0x7ad   : > { %v2222_v8 = vpop.eup %2221 }
 0x7ae   : > { %1264 = vst.msk [vmem:[#allocation2] sm:$0x80] %vm1263_vm9, %v2222_v8  ;;  %1265 = vst.msk [vmem:[%s515_s26 - $0x7] sm:$0x80] %vm1263_vm9, %v2222_v8 }
 0x7b5   : > { %v1266_v9 = vld [vmem:[#allocation2] sm:$0xff] }
 0x7b6   : > { %2029 = vmatmul.mubr.msk.f32.vlgmr.msra.gmra.mrb[8].mxu1 %vm543_vm1, %v1266_v9 }
 0x7b7   : > { %2044 = vmatprep.mubr.msk.f32.mxu1 %vm2457_vm0, %v2458_v1  ;;  %2120 = vmatpush3.bf16.msra.mxu1 %v2119_v22 }
 0x7b8   : > { %2121 = vmatprep.subr.bf16.mxu1 %v2456_v0 }
 0x7bb   : > { %2123 = vmatpush3.bf16.msra.mxu1 %v2122_v24 }
 0x889   : > { %v1340_v10 = vpop.f32.mrb[8].mxu1 }
 0x88a   : > { %v2030_v11 = vpop.f32.mrb[9].mxu1  ;;  %v1345_v12 = vsel %vm1344_vm10, %v1340_v10, -inf }
 0x88b   : > { %1346 = vmax.xlane.f32.xlu0 %v1345_v12 }
 0x918   : > { %v1347_v13 = vpop.xlane.xlu0 %1346 }
 0x919   : > { %v1348_v14 = vsub.f32 %v1340_v10, %v1347_v13 }
 0x91b   : > { %v1349_v15 = vmul.f32 1.442695, %v1348_v14 }
 0x91d   : > { %2223 = vpow2.f32 %v1349_v15 }
 0x927   : > { %v2224_v16 = vpop.eup %2223 }
 0x928   : > { %v1351_v17 = vsel %vm1344_vm10, %v2224_v16, 0.0 }
 0x929   : > { %1352 = vadd.xlane.f32.xlu0 %v1351_v17 }
 0x9b6   : > { %v1353_v25 = vpop.xlane.xlu0 %1352 }
 0x9b7   : > { %2225 = vrcp.f32 %v1353_v25 }
 0x9c1   : > { %v2226_v28 = vpop.eup %2225 }
 0x9c2   : > { %v1355_v30 = vmul.f32 %v2226_v28, %v2224_v16 }
 0x9c4   : > { %2034 = vmatmul.mubr.msk.f32.vlgmr.msra.gmra.mrb[10].mxu0 %vm1344_vm10, %v1355_v30  ;;  %1590 = vst.msk [vmem:[%s522_s16] sm:$0xff] %vm1344_vm10, %v1355_v30 }
 0x9c5   : > { %2126 = vmatpush3.bf16.msra.mxu0 %v2125_v29  ;;  %2055 = vmatprep.mubr.msk.f32.mxu0 %vm2457_vm0, %v2458_v1 }
 0x9c6   : > { %2127 = vmatprep.subr.bf16.mxu0 %v2456_v0 }
 0x9c9   : > { %2129 = vmatpush3.bf16.msra.mxu0 %v2128_v33 }
 0x9cc   : > { %2056 = vmatmul.mubr.msk.f32.vlgmr.msra.gmra.mrb[12].mxu0 %vm543_vm1, %v1266_v9 }
 0xa97   : > { %v1426_v34 = vpop.f32.mrb[10].mxu0 }
 0xa98   : > { %v2035_v35 = vpop.f32.mrb[11].mxu0  ;;  %2045 = vmatmul.mubr.msk.f32.vlgmr.msra.gmra.mrb[10].mxu1 %vm543_vm1, %v1426_v34 }
 0xa9f   : > { %v2875_v36 = vpop.f32.mrb[12].mxu0 }
 0xaa0   : > { %v2057_v37 = vpop.f32.mrb[13].mxu0 }
 0xaa1   : > { %2328 = shalt.err (!%p2325_p6)
}
 0xaa2   : > { %s2329_s29 = scalar_lea.hbm %s2881_s18, 16  ;;  %s2333_s30 = scalar_lea.hbm %s3002_s11, 32 }
 0xaa3   : > { %p2330_p8 = scmp.ne.s32.totalorder %s2881_s18, %s2329_s29  ;;  %p2334_p11 = scmp.lt.u32.totalorder %s2881_s18, %s3002_s11 }
 0xaa4   : > { %p2335_p0 = scmp.lt.u32.totalorder %s2333_s30, %s2329_s29  ;;  %p2337_p13 = scmp.lt.u32.totalorder %s2329_s29, %s2881_s18 }
 0xaa5   : > { %p2331_p4 = pnand %p2330_p8, %p3037_p3 }
 0xaa6   : > { %p2336_p10 = por %p2335_p0, %p2334_p11 }
 0xaa7   : > { %p2332_p12 = pneg %p2331_p4 }
 0xaa8   : > { %p2338_p7 = por %p2337_p13, %p2336_p10 }
 0xaaa   : > { %p2339_p9 = pnand %p2338_p7, %p2332_p12 }
 0xaac   : > { %2342 = shalt.err (!%p2339_p9)
}
 0xaad   : > { %2139 = dma.vmem_to_hbm [thread:$0]  (%p3037_p3), %s1628_s14, 16, %s2881_s18, %s2887_s27  }
 0xaae   : > { %s1853_s13 = sshll.u32 %s2548_s25, 7  ;;  %s3038_s9 = sld [smem:[#allocation26_spill]] }
 0xaaf   : > { %s1640_s20 = sshll.u32 %s522_s16, 4  ;;  %s2460_s26 = smov [#allocation12]   ;;  %s1641_s20 = int_to_ptr.vmem [resolvable:$true] %s1640_s20 }
 0xab0   : > { %s2343_s29 = scalar_lea.vmem %s1641_s20, 128  ;;  %s2347_s8 = sshll.u32 %s2460_s26, 4  ;;  %s2348_s8 = int_to_ptr.vmem [resolvable:$false] %s2347_s8 }
 0xab1   : > { %p2344_p2 = scmp.ne.s32.totalorder %s1641_s20, %s2343_s29  ;;  %s2349_s30 = scalar_lea.vmem %s2348_s8, 256 }
 0xab2   : > { %p2350_p6 = scmp.lt.s32.totalorder %s1641_s20, %s2348_s8  ;;  %p2351_p8 = scmp.lt.s32.totalorder %s2349_s30, %s2343_s29 }
 0xab3   : > { %p2345_p5 = pnand %p2344_p2, %p3037_p3 }
 0xab4   : > { %s2913_s28 = scalar_lea.hbm %s3038_s9, %s1853_s13  ;;  %p2352_p4 = por %p2351_p8, %p2350_p6 }
 0xab5   : > { %p2346_p1 = pneg %p2345_p5 }
 0xab7   : > { %p2353_p12 = pnand %p2352_p4, %p2346_p1 }
 0xab9   : > { %2356 = shalt.err (!%p2353_p12)
}
 0xaba   : > { %s2357_s16 = scalar_lea.hbm %s2913_s28, 128  ;;  %s2361_s12 = scalar_lea.hbm %s3038_s9, 256 }
 0xabb   : > { %p2358_p11 = scmp.ne.s32.totalorder %s2913_s28, %s2357_s16  ;;  %p2362_p13 = scmp.lt.u32.totalorder %s2913_s28, %s3038_s9 }
 0xabc   : > { %p2363_p7 = scmp.lt.u32.totalorder %s2361_s12, %s2357_s16  ;;  %p2365_p2 = scmp.lt.u32.totalorder %s2357_s16, %s2913_s28 }
 0xabd   : > { %p2359_p0 = pnand %p2358_p11, %p3037_p3 }
 0xabe   : > { %p2364_p9 = por %p2363_p7, %p2362_p13 }
 0xabf   : > { %p2360_p10 = pneg %p2359_p0 }
 0xac0   : > { %p2366_p5 = por %p2365_p2, %p2364_p9 }
 0xac2   : > { %p2367_p1 = pnand %p2366_p5, %p2360_p10 }
 0xac4   : > { %2370 = shalt.err (!%p2367_p1)
}
 0xac5   : > { %2140 = dma.vmem_to_hbm [thread:$0]  (%p3037_p3), %s1641_s20, 128, %s2913_s28, %s2887_s27  }
 0xac6   : > { %s3039_s26 = sld [smem:[#allocation24_spill]]  ;;  %s509_s8 = scalar_lea.vmem [#allocation9], %s2697_s15 }
 0xac7   : > { %s1614_s30 = sshll.u32 %s509_s8, 4  ;;  %s3040_s14 = sld [smem:[#allocation25_spill]]  ;;  %s2947_s30 = int_to_ptr.vmem [resolvable:$true] %s1614_s30 }
 0xac8   : > { %s1592_s27 = scalar_lea.sflag [#allocation5], %s2694_s23  ;;  %s2371_s28 = scalar_lea.vmem %s2947_s30, 128 }
 0xac9   : > { %p2372_p6 = scmp.ne.s32.totalorder %s2947_s30, %s2371_s28  ;;  %s2461_s15 = smov [#allocation9]  }
 0xaca   : > { %s2375_s20 = sshll.u32 %s2461_s15, 4  ;;  %s2376_s20 = int_to_ptr.vmem [resolvable:$false] %s2375_s20 }
 0xacb   : > { %p2373_p8 = pnand %p2372_p6, %p3037_p3  ;;  %s2377_s25 = scalar_lea.vmem %s2376_s20, 256 }
 0xacc   : > { %v1850_v1 = vld [vmem:[%s3039_s26] ss:$0 sm:$0xff]  ;;  %p2378_p12 = scmp.lt.s32.totalorder %s2947_s30, %s2376_s20  ;;  %p2379_p11 = scmp.lt.s32.totalorder %s2377_s25, %s2371_s28 }
 0xacd   : > { %s2945_s12 = scalar_lea.hbm %s3040_s14, %s1853_s13  ;;  %p2374_p4 = pneg %p2373_p8 }
 0xace   : > { %p2380_p0 = por %p2379_p11, %p2378_p12 }
 0xad0   : > { %p2381_p10 = pnand %p2380_p0, %p2374_p4 }
 0xb6b   : > { %v1507_v0 = vpop.f32.mrb[10].mxu1 }
 0xb6c   : > { %v1578_v38 = vadd.f32 %v2875_v36, %v1507_v0  ;;  %v2046_v39 = vpop.f32.mrb[11].mxu1 }
 0xb6e   : > { %v1588_v40 = vadd.f32 %v1850_v1, %v1578_v38 }
 0xb70   : > { %1589 = vst [vmem:[%s509_s8] sm:$0xff] %v1588_v40 }
 0xb71   : > { %2384 = shalt.err (!%p2381_p10)
}
 0xb72   : > { %s2385_s23 = scalar_lea.hbm %s2945_s12, 128  ;;  %s2389_s17 = scalar_lea.hbm %s3040_s14, 256 }
 0xb73   : > { %p2386_p13 = scmp.ne.s32.totalorder %s2945_s12, %s2385_s23  ;;  %p2390_p2 = scmp.lt.u32.totalorder %s2945_s12, %s3040_s14 }
 0xb74   : > { %p2391_p5 = scmp.lt.u32.totalorder %s2389_s17, %s2385_s23  ;;  %p2393_p6 = scmp.lt.u32.totalorder %s2385_s23, %s2945_s12 }
 0xb75   : > { %p2387_p7 = pnand %p2386_p13, %p3037_p3 }
 0xb76   : > { %p2392_p1 = por %p2391_p5, %p2390_p2 }
 0xb77   : > { %p2388_p9 = pneg %p2387_p7 }
 0xb78   : > { %p2394_p8 = por %p2393_p6, %p2392_p1 }
 0xb7a   : > { %p2395_p4 = pnand %p2394_p8, %p2388_p9 }
 0xb7c   : > { %2398 = shalt.err (!%p2395_p4)
}
 0xb7d   : > { %2138 = dma.vmem_to_hbm [thread:$0]  (%p3037_p3), %s2947_s30, 128, %s2945_s12, %s1592_s27  }
 0xb7e PF: > { %s3041_s26 = sld [smem:[#allocation18_spill]]  ;;  %s3042_s8 = sld [smem:[#allocation20_spill]] }
 0xb7f   : > { %p3044_p11 = scmp.ge.s32.totalorder %s2449_s24, 2 }
 0xb84   : > { %s1652_s16 = sand.u32 1, %s3041_s26   ;;  %p3043_p12 = scmp.ne.s32.totalorder %s3042_s8, 0 }
 0xb85   : > { %s1653_s18 = scalar_lea.sflag [#allocation5], %s1652_s16 }
 0xb86   : > { %p2156_p0 = pnand %p3044_p11, %p3043_p12 }
 0xb88   : > { %2428 = dma.done.wait (!%p2156_p0), %s1653_s18, 128  }
 0xb89   : > { %2430 = vsyncadd (!%p2156_p0), %s1653_s18, 4294967168  ;;  %s3045_s28 = sadd.s32 4294967294, %s2449_s24  }
 0xb8a   : > { %s1661_s15 = sand.u32 1, %s3045_s28  }
 0xb8b   : > { %s1662_s20 = scalar_lea.sflag [#allocation11], %s1661_s15 }
 0xb8c   : > { %2432 = dma.done.wait (!%p2156_p0), %s1662_s20, 144  }
 0xb8d   : > { %2434 = vsyncadd (!%p2156_p0), %s1662_s20, 4294967152  ;;  %s3046_s24 = sld [smem:[#allocation21_spill]]  ;;  %s3047_s19 = sld [smem:[#allocation19_spill]] }
 0xb8e   : > { %s3048_s23 = sld [smem:[#allocation22_spill]]  ;;  %s3049_s21 = smov %s2441_s22 }
 0xb93   : > { %p32_p3 = scmp.ge.s32.totalorder %s3046_s24, 4   ;;  %s3050_s22 = smov %s3047_s19 }
 0xb95   :  { %34 = sbr.rel (!%p32_p3) target bundleno = 14 (0xe), region = 160 }
 0xb9c   :  { %1675 = vsyncpa [#allocation4], 1 }
 0xb9d   :  { %1677 = vsyncpa [#allocation4 + $0x1], 1 }
 0xb9e   :  { %1678 = vsyncpa [#allocation7], 1 }
 0xb9f   :  { %1680 = vsyncpa [#allocation7 + $0x1], 1 }
 0xba0   :  { %1681 = vsyncpa [#allocation5], 1 }
 0xba1   :  { %1683 = vsyncpa [#allocation5 + $0x1], 1 }
 0xba2   :  { %1684 = vsyncpa [#allocation11], 1 }
 0xba3   :  { %1686 = vsyncpa [#allocation11 + $0x1], 1 }

</bundles_post_ra>
